<compile_context>
chip_gen: v5e
topology: v5e:2x2
jax: 0.10.0
libtpu: 0.0.40
codegen_flags: <defaults>
</compile_context>

<pallas_src>
import functools

import jax
import jax.numpy as jnp
from jax import lax
from jax.experimental import pallas as pl
from jax.experimental.pallas import tpu as pltpu

_LN_EPS = 1e-5      # nn.LayerNorm default eps
_NORM_EPS = 1e-8    # _norm_no_nan clamp


def _round_up(n, m):
    return ((n + m - 1) // m) * m


def _sublane(dtype):
    # 16-bit dtypes pack two rows per sublane -> need a multiple of 16.
    return 16 if jnp.dtype(dtype).itemsize == 2 else 8


def _gvp_layernorm_kernel(s_ref, vf_ref, w_ref, b_ref, so_ref, vo_ref, *, V, C):
    s = s_ref[...].astype(jnp.float32)            # [bn, S]
    vf = vf_ref[...].astype(jnp.float32)          # [bn, V*C]

    # ---- scalar branch: LayerNorm over last dim (biased var, eps=1e-5) ----
    mean = jnp.mean(s, axis=-1, keepdims=True)
    cen = s - mean
    var = jnp.mean(cen * cen, axis=-1, keepdims=True)
    s_out = cen * lax.rsqrt(var + _LN_EPS)
    s_out = s_out * w_ref[...].astype(jnp.float32) + b_ref[...].astype(jnp.float32)
    so_ref[...] = s_out.astype(so_ref.dtype)

    # ---- vector branch: v / sqrt(mean_over_V(clamp(sum_xyz v^2, 1e-8))) ----
    # Per-channel squared norms from the flat layout via contiguous lane slices.
    # V is small & static, unrolled at trace time; exact f32, no reshape.
    # TODO(synk): for large V, replace with one MXU dot against a constant
    # [V*C, V] 0/1 segment matrix (MXU is idle in this kernel).
    vsq = vf * vf
    acc = jnp.zeros((vf.shape[0], 1), jnp.float32)
    for c in range(V):
        ch = jnp.sum(vsq[:, c * C:(c + 1) * C], axis=-1, keepdims=True)
        acc = acc + jnp.maximum(ch, _NORM_EPS)
    inv_vn = lax.rsqrt(acc * (1.0 / V))           # [bn, 1]; rsqrt on EUP
    vo_ref[...] = (vf * inv_vn).astype(vo_ref.dtype)


def gvp_layernorm(s, v, weight, bias, *, block_n=2048):
    """Pallas forward for LayerNorm((s_dims, v_dims)) applied to (s, v)."""
    N, S = s.shape
    Nv, V, C = v.shape
    assert Nv == N
    VC = V * C

    # Free, contiguous reshape: no data movement outside the kernel.
    vf = v.reshape(N, VC)

    sublane = max(_sublane(s.dtype), _sublane(v.dtype))
    # Cap the row tile so the grid has >= 2 blocks when N permits (feeds both
    # v7x TensorCores); the pl.cdiv grid handles the partial last block, so no
    # wrapper-side padding is needed (rows are independent; OOB writes dropped).
    half = _round_up(max(pl.cdiv(N, 2), 1), sublane)
    bn = max(sublane, min(_round_up(block_n, sublane), half))
    num_blocks = pl.cdiv(N, bn)

    kernel = functools.partial(_gvp_layernorm_kernel, V=V, C=C)

    s_out, v_out = pl.pallas_call(
        kernel,
        out_shape=(
            jax.ShapeDtypeStruct((N, S), s.dtype),
            jax.ShapeDtypeStruct((N, VC), v.dtype),
        ),
        grid=(num_blocks,),
        in_specs=[
            pl.BlockSpec((bn, S), lambda i: (i, 0)),
            pl.BlockSpec((bn, VC), lambda i: (i, 0)),
            pl.BlockSpec((1, S), lambda i: (0, 0)),
            pl.BlockSpec((1, S), lambda i: (0, 0)),
        ],
        out_specs=(
            pl.BlockSpec((bn, S), lambda i: (i, 0)),
            pl.BlockSpec((bn, VC), lambda i: (i, 0)),
        ),
        compiler_params=pltpu.CompilerParams(
            dimension_semantics=("parallel",),      # megacore sharding on v7x
            vmem_limit_bytes=32 * 1024 * 1024,      # load-bearing on v5e defaults
        ),
    )(s, vf, weight.reshape(1, S), bias.reshape(1, S))

    return s_out, v_out.reshape(N, V, C)


def _reference(s, v, weight, bias):
    s32 = s.astype(jnp.float32)
    mean = jnp.mean(s32, axis=-1, keepdims=True)
    var = jnp.mean((s32 - mean) ** 2, axis=-1, keepdims=True)
    s_out = (s32 - mean) / jnp.sqrt(var + _LN_EPS) * weight + bias
    v32 = v.astype(jnp.float32)
    vn = jnp.maximum(jnp.sum(v32 * v32, axis=-1, keepdims=True), _NORM_EPS)
    vn = jnp.sqrt(jnp.mean(vn, axis=-2, keepdims=True))
    return s_out.astype(s.dtype), (v32 / vn).astype(v.dtype)


if __name__ == "__main__":
    # node_dims = (S, V) of the module; rows = n_nodes * n_conf flattened.
    n_nodes, n_conf, S, V, C = 6, 3, 32, 4, 3
    N = n_nodes * n_conf                       # 18 — deliberately not a multiple of 8
    key = jax.random.PRNGKey(0)
    ks, kv = jax.random.split(key)
    s = jax.random.normal(ks, (n_nodes, n_conf, S), dtype=jnp.float32).reshape(N, S)
    v = jax.random.normal(kv, (n_nodes, n_conf, V, C), dtype=jnp.float32).reshape(N, V, C)
    weight = jnp.ones((S,), dtype=jnp.float32)   # nn.LayerNorm default init
    bias = jnp.zeros((S,), dtype=jnp.float32)

    s_ref, v_ref = _reference(s, v, weight, bias)

    # Default path: row tile capped at 16 -> 2 grid steps, partial last block.
    s_out, v_out = gvp_layernorm(s, v, weight, bias)
    jax.block_until_ready((s_out, v_out))
    assert s_out.shape == (N, S) and v_out.shape == (N, V, C)
    assert jnp.allclose(s_out, s_ref, atol=1e-5, rtol=1e-5)
    assert jnp.allclose(v_out, v_ref, atol=1e-5, rtol=1e-5)

    # Small-tile path: 3 grid steps of 8 rows, partial last block (2 valid rows).
    s_out2, v_out2 = gvp_layernorm(s, v, weight, bias, block_n=8)
    jax.block_until_ready((s_out2, v_out2))
    assert jnp.allclose(s_out2, s_ref, atol=1e-5, rtol=1e-5)
    assert jnp.allclose(v_out2, v_ref, atol=1e-5, rtol=1e-5)

    # TODO(synk): scalar-only (`not self.v`) branch is plain nn.LayerNorm; covered by
    # the same scalar-branch math, no separate entry point provided.
    print("KERNEL_OK")
</pallas_src>

<mosaic_0001>
module attributes {stable_mosaic.version = 11 : i64} {
  func.func @_gvp_layernorm_kernel(%arg0: i32, %arg1: memref<16x32xf32, #tpu.memory_space<vmem>>, %arg2: memref<16x12xf32, #tpu.memory_space<vmem>>, %arg3: memref<1x32xf32, #tpu.memory_space<vmem>>, %arg4: memref<1x32xf32, #tpu.memory_space<vmem>>, %arg5: memref<16x32xf32, #tpu.memory_space<vmem>>, %arg6: memref<16x12xf32, #tpu.memory_space<vmem>>) attributes {dimension_semantics = [#tpu.dimension_semantics<parallel>], iteration_bounds = array<i64: 2>, scalar_prefetch = 0 : i64, scratch_operands = 0 : i64, tpu.core_type = #tpu.core_type<tc>, window_params = [{transform_indices = @transform_0, window_bounds = array<i64: 16, 32>}, {transform_indices = @transform_1, window_bounds = array<i64: 16, 12>}, {pipeline_mode = #tpu.pipeline_mode<synchronous>, transform_indices = @transform_2, window_bounds = array<i64: 1, 32>}, {pipeline_mode = #tpu.pipeline_mode<synchronous>, transform_indices = @transform_3, window_bounds = array<i64: 1, 32>}, {transform_indices = @transform_4, window_bounds = array<i64: 16, 32>}, {transform_indices = @transform_5, window_bounds = array<i64: 16, 12>}]} {
    %c0 = arith.constant 0 : index
    %c0_0 = arith.constant 0 : index
    %0 = vector.load %arg1[%c0, %c0_0] : memref<16x32xf32, #tpu.memory_space<vmem>>, vector<16x32xf32>
    %c0_1 = arith.constant 0 : index
    %c0_2 = arith.constant 0 : index
    %1 = vector.load %arg2[%c0_1, %c0_2] : memref<16x12xf32, #tpu.memory_space<vmem>>, vector<16x12xf32>
    %cst = arith.constant dense<0.000000e+00> : vector<16xf32>
    %2 = vector.multi_reduction <add>, %0, %cst [1] : vector<16x32xf32> to vector<16xf32>
    %3 = vector.shape_cast %2 : vector<16xf32> to vector<16x1xf32>
    %cst_3 = arith.constant 3.200000e+01 : f32
    %4 = vector.broadcast %cst_3 : f32 to vector<16x1xf32>
    %5 = arith.divf %3, %4 : vector<16x1xf32>
    %6 = vector.broadcast %5 : vector<16x1xf32> to vector<16x32xf32>
    %7 = arith.subf %0, %6 : vector<16x32xf32>
    %8 = arith.mulf %7, %7 : vector<16x32xf32>
    %cst_4 = arith.constant dense<0.000000e+00> : vector<16xf32>
    %9 = vector.multi_reduction <add>, %8, %cst_4 [1] : vector<16x32xf32> to vector<16xf32>
    %10 = vector.shape_cast %9 : vector<16xf32> to vector<16x1xf32>
    %cst_5 = arith.constant 3.200000e+01 : f32
    %11 = vector.broadcast %cst_5 : f32 to vector<16x1xf32>
    %12 = arith.divf %10, %11 : vector<16x1xf32>
    %cst_6 = arith.constant 9.99999974E-6 : f32
    %13 = vector.broadcast %cst_6 : f32 to vector<16x1xf32>
    %14 = arith.addf %12, %13 : vector<16x1xf32>
    %15 = math.rsqrt %14 : vector<16x1xf32>
    %16 = vector.broadcast %15 : vector<16x1xf32> to vector<16x32xf32>
    %17 = arith.mulf %7, %16 : vector<16x32xf32>
    %c0_7 = arith.constant 0 : index
    %c0_8 = arith.constant 0 : index
    %18 = vector.load %arg3[%c0_7, %c0_8] : memref<1x32xf32, #tpu.memory_space<vmem>>, vector<1x32xf32>
    %19 = vector.broadcast %18 : vector<1x32xf32> to vector<16x32xf32>
    %20 = arith.mulf %17, %19 : vector<16x32xf32>
    %c0_9 = arith.constant 0 : index
    %c0_10 = arith.constant 0 : index
    %21 = vector.load %arg4[%c0_9, %c0_10] : memref<1x32xf32, #tpu.memory_space<vmem>>, vector<1x32xf32>
    %22 = vector.broadcast %21 : vector<1x32xf32> to vector<16x32xf32>
    %23 = arith.addf %20, %22 : vector<16x32xf32>
    %c0_11 = arith.constant 0 : index
    %c0_12 = arith.constant 0 : index
    %24 = vector.load %arg5[%c0_11, %c0_12] : memref<16x32xf32, #tpu.memory_space<vmem>>, vector<16x32xf32>
    tpu.vector_store %arg5[%c0_11, %c0_12], %23 {strides = array<i32>} : memref<16x32xf32, #tpu.memory_space<vmem>>, vector<16x32xf32>,
    %25 = arith.mulf %1, %1 : vector<16x12xf32>
    %cst_13 = arith.constant 0.000000e+00 : f32
    %26 = vector.broadcast %cst_13 : f32 to vector<16x1xf32>
    %27 = vector.extract_strided_slice %25 {offsets = [0, 0], sizes = [16, 3], strides = [1, 1]} : vector<16x12xf32> to vector<16x3xf32>
    %cst_14 = arith.constant dense<0.000000e+00> : vector<16xf32>
    %28 = vector.multi_reduction <add>, %27, %cst_14 [1] : vector<16x3xf32> to vector<16xf32>
    %29 = vector.shape_cast %28 : vector<16xf32> to vector<16x1xf32>
    %cst_15 = arith.constant 9.99999993E-9 : f32
    %30 = vector.broadcast %cst_15 : f32 to vector<16x1xf32>
    %31 = arith.maximumf %29, %30 : vector<16x1xf32>
    %32 = arith.addf %26, %31 : vector<16x1xf32>
    %33 = vector.extract_strided_slice %25 {offsets = [0, 3], sizes = [16, 3], strides = [1, 1]} : vector<16x12xf32> to vector<16x3xf32>
    %cst_16 = arith.constant dense<0.000000e+00> : vector<16xf32>
    %34 = vector.multi_reduction <add>, %33, %cst_16 [1] : vector<16x3xf32> to vector<16xf32>
    %35 = vector.shape_cast %34 : vector<16xf32> to vector<16x1xf32>
    %cst_17 = arith.constant 9.99999993E-9 : f32
    %36 = vector.broadcast %cst_17 : f32 to vector<16x1xf32>
    %37 = arith.maximumf %35, %36 : vector<16x1xf32>
    %38 = arith.addf %32, %37 : vector<16x1xf32>
    %39 = vector.extract_strided_slice %25 {offsets = [0, 6], sizes = [16, 3], strides = [1, 1]} : vector<16x12xf32> to vector<16x3xf32>
    %cst_18 = arith.constant dense<0.000000e+00> : vector<16xf32>
    %40 = vector.multi_reduction <add>, %39, %cst_18 [1] : vector<16x3xf32> to vector<16xf32>
    %41 = vector.shape_cast %40 : vector<16xf32> to vector<16x1xf32>
    %cst_19 = arith.constant 9.99999993E-9 : f32
    %42 = vector.broadcast %cst_19 : f32 to vector<16x1xf32>
    %43 = arith.maximumf %41, %42 : vector<16x1xf32>
    %44 = arith.addf %38, %43 : vector<16x1xf32>
    %45 = vector.extract_strided_slice %25 {offsets = [0, 9], sizes = [16, 3], strides = [1, 1]} : vector<16x12xf32> to vector<16x3xf32>
    %cst_20 = arith.constant dense<0.000000e+00> : vector<16xf32>
    %46 = vector.multi_reduction <add>, %45, %cst_20 [1] : vector<16x3xf32> to vector<16xf32>
    %47 = vector.shape_cast %46 : vector<16xf32> to vector<16x1xf32>
    %cst_21 = arith.constant 9.99999993E-9 : f32
    %48 = vector.broadcast %cst_21 : f32 to vector<16x1xf32>
    %49 = arith.maximumf %47, %48 : vector<16x1xf32>
    %50 = arith.addf %44, %49 : vector<16x1xf32>
    %cst_22 = arith.constant 2.500000e-01 : f32
    %51 = vector.broadcast %cst_22 : f32 to vector<16x1xf32>
    %52 = arith.mulf %50, %51 : vector<16x1xf32>
    %53 = math.rsqrt %52 : vector<16x1xf32>
    %54 = vector.broadcast %53 : vector<16x1xf32> to vector<16x12xf32>
    %55 = arith.mulf %1, %54 : vector<16x12xf32>
    %c0_23 = arith.constant 0 : index
    %c0_24 = arith.constant 0 : index
    %56 = vector.load %arg6[%c0_23, %c0_24] : memref<16x12xf32, #tpu.memory_space<vmem>>, vector<16x12xf32>
    tpu.vector_store %arg6[%c0_23, %c0_24], %55 {strides = array<i32>} : memref<16x12xf32, #tpu.memory_space<vmem>>, vector<16x12xf32>,
    return
  }
  func.func @transform_0(%arg0: i32) -> (i32, i32) {
    %c0_i32 = arith.constant 0 : i32
    %c0_i32_0 = arith.constant 0 : i32
    return %arg0, %c0_i32 : i32, i32
  }
  func.func @transform_1(%arg0: i32) -> (i32, i32) {
    %c0_i32 = arith.constant 0 : i32
    %c0_i32_0 = arith.constant 0 : i32
    return %arg0, %c0_i32 : i32, i32
  }
  func.func @transform_2(%arg0: i32) -> (i32, i32) {
    %c0_i32 = arith.constant 0 : i32
    %c0_i32_0 = arith.constant 0 : i32
    %c0_i32_1 = arith.constant 0 : i32
    return %c0_i32, %c0_i32_0 : i32, i32
  }
  func.func @transform_3(%arg0: i32) -> (i32, i32) {
    %c0_i32 = arith.constant 0 : i32
    %c0_i32_0 = arith.constant 0 : i32
    %c0_i32_1 = arith.constant 0 : i32
    return %c0_i32, %c0_i32_0 : i32, i32
  }
  func.func @transform_4(%arg0: i32) -> (i32, i32) {
    %c0_i32 = arith.constant 0 : i32
    %c0_i32_0 = arith.constant 0 : i32
    return %arg0, %c0_i32 : i32, i32
  }
  func.func @transform_5(%arg0: i32) -> (i32, i32) {
    %c0_i32 = arith.constant 0 : i32
    %c0_i32_0 = arith.constant 0 : i32
    return %arg0, %c0_i32 : i32, i32
  }
}

</mosaic_0001>

<bundles_post_ra>
// kernel: tpu_custom_call.1
= control target key start
LH: loop header
LB: loop body
LE: loop exit
PB: predicated region body
PF: predicated region fallthrough
CT: control target
= control target key end

     0   :  { %s1300_s0 = inlined_call_operand.vmem [shape: f32[18,32], index: 0, kind: input, shape index: {}]   ;;  %s1301_s1 = inlined_call_operand.vmem [shape: f32[18,12], index: 1, kind: input, shape index: {}]   ;;  %s1302_s2 = inlined_call_operand.vmem [shape: f32[1,32], index: 2, kind: input, shape index: {}]   ;;  %s1303_s3 = inlined_call_operand.vmem [shape: f32[1,32], index: 3, kind: input, shape index: {}]   ;;  %s1304_s4 = inlined_call_operand.hbm [shape: f32[18,32], index: 4, kind: output, shape index: {0}]   ;;  %s1305_s5 = inlined_call_operand.vmem [shape: f32[18,12], index: 5, kind: output, shape index: {1}]  }
   0x1   :  { %1307 = sst [smem:[#allocation6_spill]] %s1300_s0 }
   0x2   :  { %1308 = sst [smem:[#allocation7_spill]] %s1301_s1 }
   0x3   :  { %11 = vsyncpa [#allocation3], 0 }
   0x4   :  { %13 = vsyncpa [#allocation3 + $0x1], 0  ;;  %s1092_s18 = smov 0   ;;  %s1094_s19 = smov 0  }
   0x5   :  { %s1096_s20 = smov 0   ;;  %s1098_s21 = smov 0  }
   0x6 LB: > { %s1113_s22 = sadd.s32 4294967295, %s1021_s21   ;;  %s758_s23 = sadd.s32 4294967294, %s1021_s21   ;;  %s1021_s21 = sphi %s1098_s21, %s1318_s21   ;;  %s1017_s20 = sphi %s1096_s20, %s1317_s20   ;;  %s1013_s19 = sphi %s1094_s19, %s1316_s19   ;;  %s1009_s18 = sphi %s1092_s18, %s1315_s18  }
   0x7   : > { %s1117_s24 = sadd.s32 1, %s1021_s21   ;;  %s120_s25 = sadd.s32 1, %s1017_s20 }
   0x8   : > { %s117_s26 = ssub.s32 %s1021_s21, %s1117_s24  ;;  %p130_p0 = scmp.ne.s32.totalorder %s1017_s20, %s1013_s19 }
   0x9   : > { %p118_p1 = scmp.eq.s32.totalorder %s117_s26, 0  ;;  %p131_p2 = scmp.eq.s32.totalorder %s1113_s22, 1 }
   0xa   : > { %p136_p3 = scmp.ne.s32.totalorder %s1013_s19, %s1009_s18  ;;  %p137_p4 = scmp.eq.s32.totalorder %s758_s23, 1 }
   0xb   : > { %s1128_s27 = scalar_select %p118_p1, %s1017_s20, %s120_s25  }
   0xc   : > { %p1130_p5 = por %p131_p2, %p130_p0  ;;  %p1134_p6 = por %p137_p4, %p136_p3 }
   0xd   : > { %p761_p7 = scmp.ge.s32.totalorder %s1021_s21, 1  ;;  %p221_p8 = scmp.lt.s32.totalorder %s1021_s21, 3 }
   0xf   : > { %p222_p9 = pnand %p761_p7, %p221_p8 }
  0x10   : > { %s1141_s30 = sshll.u32 (!%p222_p9), %s1113_s22, 1  ;;  %s1311_s0 = sld [smem:[#allocation6_spill]] (!%p222_p9) }
  0x11   : > { %225 = sbr.rel (%p222_p9) target bundleno = 397 (0x18d), region = 36  ;;  %p271_p10 = scmp.lt.s32.totalorder (!%p222_p9), %s1141_s30, 2 }
  0x12   : > { %s1312_s1 = sld [smem:[#allocation7_spill]] (!%p222_p9)  ;;  %s1055_s14 = smov (!%p222_p9), 125  }
  0x13   : > { %s1056_s15 = smov (!%p222_p9), 122   ;;  %s1057_s16 = smov (!%p222_p9), 119  }
  0x14   : > { %s257_s17 = sand.u32 (!%p222_p9), 1, %s1013_s19  }
  0x16   : > { %s272_s6 = scalar_select %p271_p10, %s1141_s30, 2  ;;  %vm308_vm0 = vcmask 261120   ;;  %vm376_vm1 = vcmask 23552   ;;  %v1058_v10 = vmov 32.0   ;;  %vm461_vm12 = vcmask 97280  }
  0x17   : > { %906 = vrcp.f32 %v1058_v10  ;;  %s477_s11 = ssub.s32 (%p1130_p5), 3, %s1141_s30 }
  0x18   : > { %s765_s7 = sshll.u32 %s272_s6, 3  ;;  %p478_p11 = scmp.lt.s32.totalorder (%p1130_p5), %s477_s11, 2 }
  0x19   : > { %s274_s10 = scalar_lea.vmem %s1311_s0, %s765_s7  ;;  %s288_s13 = scalar_lea.vmem %s1312_s1, %s765_s7 }
  0x1a   : > { %v304_v0 = vld [vmem:[%s274_s10] sm:$0xff]  ;;  %v1156_v4 = vld [vmem:[%s288_s13 + $0x8] sm:$0xff]  ;;  %s1188_s7 = sshll.u32 %s257_s17, 4 }
  0x1b   : > { %v1151_v1 = vld [vmem:[%s288_s13] sm:$0xff]  ;;  %v309_v2 = vsel %vm308_vm0, %v304_v0, 0.0  ;;  %v305_v5 = vld [vmem:[%s274_s10 + $0x8] sm:$0xff]  ;;  %v375_v6 = vmul.f32 %v1156_v4, %v1156_v4  ;;  %s1192_s8 = scalar_lea.vmem [#allocation2], %s1188_s7  ;;  %s1201_s9 = scalar_lea.vmem [#allocation4], %s1188_s7  }
  0x1c   : > { %v374_v3 = vmul.f32 %v1151_v1, %v1151_v1  ;;  %310 = vadd.xlane.f32.xlu0 %v309_v2  ;;  %v312_v7 = vsel %vm308_vm0, %v305_v5, 0.0  ;;  %s1208_s10 = scalar_lea.sflag [#allocation3], %s257_s17 }
  0x1d   : > { %v380_v9 = vsel %vm376_vm1, %v375_v6, 0.0  ;;  %v907_v11 = vpop.eup %906 }
  0x1e   : > { %389 = vrot.lane.b32.xlu1 %v374_v3, %s1055_s14  ;;  %405 = vrot.lane.b32.xlu2 %v374_v3, %s1056_s15  ;;  %v377_v8 = vsel %vm376_vm1, %v374_v3, 0.0  ;;  %v316_v12 = vmul.f32 32.0, %v907_v11  ;;  %vm320_vm2 = vweird.f32 %v907_v11 }
  0x20   : > { %v317_v13 = vsub.f32 1.0, %v316_v12  ;;  %v904_v12 = vld [vmem:[%s1302_s2] ss:$0 sm:$0xff] }
  0x22   : > { %v318_v15 = vmul.f32 %v907_v11, %v317_v13 }
  0x24   : > { %313 = vadd.xlane.f32.xlu0 %v312_v7  ;;  %v319_v18 = vadd.f32 %v907_v11, %v318_v15 }
  0x26   : > { %391 = vrot.lane.b32.xlu1 %v375_v6, %s1055_s14  ;;  %407 = vrot.lane.b32.xlu2 %v375_v6, %s1056_s15  ;;  %v321_v20 = vsel %vm320_vm2, %v907_v11, %v319_v18 }
  0x2e   : > { %423 = vrot.lane.b32.xlu1 %v375_v6, %s1057_s16 }
  0x38   : > { %421 = vrot.lane.b32.xlu0 %v374_v3, %s1057_s16 }
  0x58   : > { %378 = vadd.xlane.f32.xlu1 %v377_v8 }
  0x62   : > { %381 = vadd.xlane.f32.xlu0 %v380_v9 }
  0x78   : > { %v406_v19 = vpop.permute.xlu2 %405 }
  0x79   : > { %v411_v29 = vsel %vm376_vm1, %v406_v19, 0.0 }
  0x80   : > { %v408_v31 = vpop.permute.xlu2 %407 }
  0x81   : > { %v414_v32 = vsel %vm376_vm1, %v408_v31, 0.0 }
  0x8f   : > { %v311_v16 = vpop.xlane.xlu0 %310 }
  0x90   : > { %v390_v14 = vpop.permute.xlu1 %389  ;;  %v322_v26 = vmul.f32 %v321_v20, %v311_v16  ;;  %v905_v16 = vld [vmem:[%s1303_s3] ss:$0 sm:$0xff] }
  0x91   : > { %v395_v17 = vsel %vm376_vm1, %v390_v14, 0.0 }
  0x92   : > { %396 = vadd.xlane.f32.xlu2 %v395_v17  ;;  %v1171_v30 = vsub.f32 %v304_v0, %v322_v26 }
  0x94   : > { %v326_v33 = vmul.f32 %v1171_v30, %v1171_v30 }
  0x96   : > { %v328_v34 = vsel %vm308_vm0, %v326_v33, 0.0 }
  0x97   : > { %v314_v22 = vpop.xlane.xlu0 %313 }
  0x98   : > { %v392_v21 = vpop.permute.xlu1 %391  ;;  %v323_v23 = vmul.f32 %v321_v20, %v314_v22 }
  0x99   : > { %v398_v24 = vsel %vm376_vm1, %v392_v21, 0.0 }
  0x9a   : > { %399 = vadd.xlane.f32.xlu2 %v398_v24  ;;  %v1165_v25 = vsub.f32 %v305_v5, %v323_v23 }
  0x9c   : > { %v327_v27 = vmul.f32 %v1165_v25, %v1165_v25 }
  0x9e   : > { %v331_v28 = vsel %vm308_vm0, %v327_v27, 0.0 }
  0x9f   : > { %332 = vadd.xlane.f32.xlu1 %v331_v28 }
  0xa0   : > { %v424_v37 = vpop.permute.xlu1 %423 }
  0xa1   : > { %v430_v38 = vsel %vm376_vm1, %v424_v37, 0.0 }
  0xa2   : > { %412 = vadd.xlane.f32.xlu2 %v411_v29 }
  0xa7   : > { %415 = vadd.xlane.f32.xlu1 %v414_v32 }
  0xaa   : > { %329 = vadd.xlane.f32.xlu2 %v328_v34  ;;  %v422_v35 = vpop.permute.xlu0 %421 }
  0xab   : > { %v427_v36 = vsel %vm376_vm1, %v422_v35, 0.0 }
  0xac   : > { %428 = vadd.xlane.f32.xlu0 %v427_v36 }
  0xb2   : > { %431 = vadd.xlane.f32.xlu2 %v430_v38 }
  0xcb   : > { %v379_v40 = vpop.xlane.xlu1 %378 }
  0xcc   : > { %v383_v48 = vmax.f32 %v379_v40, 1e-08 }
  0xd5   : > { %v382_v46 = vpop.xlane.xlu0 %381 }
  0xd6   : > { %v384_v57 = vmax.f32 %v382_v46, 1e-08 }
 0x105   : > { %v397_v39 = vpop.xlane.xlu2 %396 }
 0x106   : > { %v401_v47 = vmax.f32 %v397_v39, 1e-08 }
 0x108   : > { %v403_v53 = vadd.f32 %v401_v47, %v383_v48 }
 0x10d   : > { %v400_v41 = vpop.xlane.xlu2 %399 }
 0x10e   : > { %v402_v56 = vmax.f32 %v400_v41, 1e-08 }
 0x110   : > { %v404_v3 = vadd.f32 %v402_v56, %v384_v57 }
 0x112   : > { %v333_v42 = vpop.xlane.xlu1 %332 }
 0x113   : > { %v335_v43 = vmul.f32 %v333_v42, %v321_v20 }
 0x115   : > { %v413_v44 = vpop.xlane.xlu2 %412  ;;  %v337_v45 = vadd.f32 1e-05, %v335_v43 }
 0x116   : > { %v417_v49 = vmax.f32 %v413_v44, 1e-08 }
 0x117   : > { %908 = vrsqrt.f32 %v337_v45  ;;  %vm354_vm4 = vweird.f32 %v337_v45 }
 0x118   : > { %v419_v61 = vadd.f32 %v417_v49, %v403_v53 }
 0x11a   : > { %v416_v55 = vpop.xlane.xlu1 %415 }
 0x11b   : > { %v418_v63 = vmax.f32 %v416_v55, 1e-08 }
 0x11d   : > { %v330_v50 = vpop.xlane.xlu2 %329  ;;  %v909_v51 = vpop.eup %908  ;;  %v420_v8 = vadd.f32 %v418_v63, %v404_v3 }
 0x11e   : > { %v334_v52 = vmul.f32 %v330_v50, %v321_v20  ;;  %v349_v54 = vmul.f32 %v909_v51, %v337_v45  ;;  %vm355_vm3 = vweird.f32 %v909_v51 }
 0x11f   : > { %v429_v59 = vpop.xlane.xlu0 %428  ;;  %vm356_vm5 = vmor %vm354_vm4, %vm355_vm3 }
 0x120   : > { %v336_v58 = vadd.f32 1e-05, %v334_v52  ;;  %v350_v60 = vmul.f32 %v909_v51, %v349_v54  ;;  %v433_v62 = vmax.f32 %v429_v59, 1e-08 }
 0x122   : > { %910 = vrsqrt.f32 %v336_v58  ;;  %v351_v0 = vmul.f32 0.5, %v350_v60  ;;  %v435_v2 = vadd.f32 %v433_v62, %v419_v61  ;;  %vm344_vm7 = vweird.f32 %v336_v58 }
 0x124   : > { %v352_v5 = vsub.f32 1.5, %v351_v0  ;;  %v437_v6 = vmul.f32 0.25, %v435_v2 }
 0x125   : > { %v432_v7 = vpop.xlane.xlu2 %431 }
 0x126   : > { %v434_v9 = vmax.f32 %v432_v7, 1e-08  ;;  %v353_v10 = vmul.f32 %v909_v51, %v352_v5  ;;  %912 = vrsqrt.f32 %v437_v6  ;;  %vm445_vm10 = vweird.f32 %v437_v6 }
 0x128   : > { %v911_v11 = vpop.eup %910  ;;  %v436_v13 = vadd.f32 %v434_v9, %v420_v8  ;;  %v357_v14 = vsel %vm356_vm5, %v909_v51, %v353_v10 }
 0x129   : > { %v339_v15 = vmul.f32 %v911_v11, %v336_v58  ;;  %v359_v17 = vmul.f32 %v357_v14, %v1165_v25  ;;  %vm345_vm6 = vweird.f32 %v911_v11 }
 0x12a   : > { %v438_v18 = vmul.f32 0.25, %v436_v13  ;;  %vm346_vm8 = vmor %vm344_vm7, %vm345_vm6 }
 0x12b   : > { %v340_v19 = vmul.f32 %v911_v11, %v339_v15  ;;  %v365_v20 = vmul.f32 %v904_v12, %v359_v17 }
 0x12c   : > { %914 = vrsqrt.f32 %v438_v18  ;;  %v913_v21 = vpop.eup %912  ;;  %vm455_vm14 = vweird.f32 %v438_v18 }
 0x12d   : > { %v341_v22 = vmul.f32 0.5, %v340_v19  ;;  %v371_v23 = vadd.f32 %v905_v16, %v365_v20  ;;  %v440_v24 = vmul.f32 %v913_v21, %v437_v6  ;;  %vm446_vm9 = vweird.f32 %v913_v21 }
 0x12e   : > { %vm447_vm11 = vmor %vm445_vm10, %vm446_vm9 }
 0x12f   : > { %v342_v26 = vsub.f32 1.5, %v341_v22  ;;  %373 = vst.msk [vmem:[%s1192_s8 + $0x8] sm:$0xff] %vm308_vm0, %v371_v23  ;;  %v441_v27 = vmul.f32 %v913_v21, %v440_v24 }
 0x131   : > { %v343_v28 = vmul.f32 %v911_v11, %v342_v26  ;;  %v442_v25 = vmul.f32 0.5, %v441_v27 }
 0x132   : > { %v915_v29 = vpop.eup %914 }
 0x133   : > { %v347_v31 = vsel %vm346_vm8, %v911_v11, %v343_v28  ;;  %v450_v32 = vmul.f32 %v915_v29, %v438_v18  ;;  %v443_v34 = vsub.f32 1.5, %v442_v25  ;;  %vm456_vm13 = vweird.f32 %v915_v29 }
 0x134   : > { %v358_v33 = vmul.f32 %v347_v31, %v1171_v30  ;;  %vm457_vm15 = vmor %vm455_vm14, %vm456_vm13 }
 0x135   : > { %v451_v35 = vmul.f32 %v915_v29, %v450_v32  ;;  %v444_v37 = vmul.f32 %v913_v21, %v443_v34 }
 0x136   : > { %v364_v36 = vmul.f32 %v904_v12, %v358_v33 }
 0x137   : > { %v452_v38 = vmul.f32 0.5, %v451_v35  ;;  %v448_v40 = vsel %vm447_vm11, %v913_v21, %v444_v37 }
 0x138   : > { %v370_v39 = vadd.f32 %v905_v16, %v364_v36  ;;  %v459_v41 = vmul.f32 %v448_v40, %v1151_v1 }
 0x139   : > { %v453_v42 = vsub.f32 1.5, %v452_v38 }
 0x13a   : > { %372 = vst.msk [vmem:[%s1192_s8] sm:$0xff] %vm308_vm0, %v370_v39 }
 0x13b   : > { %462 = vst.msk [vmem:[%s1201_s9] sm:$0xff] %vm461_vm12, %v459_v41  ;;  %v454_v30 = vmul.f32 %v915_v29, %v453_v42 }
 0x13c   : > { %475 = sbr.rel (!%p1130_p5) target bundleno = 353 (0x161), region = 40 }
 0x13d   : > { %v458_v43 = vsel %vm457_vm15, %v915_v29, %v454_v30 }
 0x13e   : > { %v460_v44 = vmul.f32 %v458_v43, %v1156_v4 }
 0x140   : > { %463 = vst.msk [vmem:[%s1201_s9 + $0x8] sm:$0xff] %vm461_vm12, %v460_v44 }
 0x141   : > { %s1320_s11 = smov (!%p478_p11, %s477_s11), 2 }
 0x142   : > { %s771_s12 = sshll.u32 %s1320_s11, 3 }
 0x143   : > { %s481_s13 = ssub.s32 16, %s771_s12 }
 0x144   : > { %s482_s14 = sshll.u32 %s481_s13, 4 }
 0x145   : > { %483 = vsyncadd %s1208_s10, %s482_s14  ;;  %p1217_p12 = scmp.ne.s32.totalorder %s771_s12, 0  ;;  %s792_s16 = sshll.u32 %s1113_s22, 4 }
 0x146   : > { %s486_s25 = scalar_lea.hbm %s1304_s4, %s792_s16  ;;  %s488_s26 = sshll.u32 %s1192_s8, 4  ;;  %s1226_s26 = int_to_ptr.vmem [resolvable:$true] %s488_s26 }
 0x147   : > { %s490_s6 = sshll.u32 %s486_s25, 4  ;;  %s1306_s7 = sshll.u32 %s1320_s11, 7  ;;  %s1228_s6 = int_to_ptr.hbm [resolvable:$true] %s490_s6 }
 0x148   : > { %s916_s13 = sshra.s32 %s1226_s26, 4  ;;  %s918_s12 = sshrl.u32 %s1306_s7, 4  ;;  %s917_s13 = int_to_ptr.vmem [resolvable:$true] %s916_s13 }
 0x149   : > { %s923_s14 = scalar_lea.vmem %s917_s13, %s918_s12  ;;  %s1059_s0 = smov [#allocation2]  }
 0x14a   : > { %p924_p13 = scmp.ne.s32.totalorder %s917_s13, %s923_s14  ;;  %s927_s17 = scalar_lea.vmem %s1059_s0, 32 }
 0x14b   : > { %p929_p2 = scmp.lt.s32.totalorder %s927_s17, %s923_s14 }
 0x14c   : > { %p925_p0 = pnand %p924_p13, %p1217_p12 }
 0x14e   : > { %p926_p1 = pneg %p925_p0 }
 0x150   : > { %p931_p3 = pnand %p929_p2, %p926_p1 }
 0x152   : > { %934 = shalt.err (!%p931_p3)
}
 0x153   : > { %s935_s8 = sshra.s32 %s1228_s6, 4  ;;  %s946_s13 = scalar_lea.hbm %s1304_s4, 24  ;;  %s936_s8 = int_to_ptr.hbm [resolvable:$true] %s935_s8 }
 0x154   : > { %s942_s16 = scalar_lea.hbm %s936_s8, %s918_s12  ;;  %p947_p9 = scmp.lt.s32.totalorder %s936_s8, %s1304_s4 }
 0x155   : > { %p943_p4 = scmp.ne.s32.totalorder %s936_s8, %s942_s16  ;;  %p948_p10 = scmp.lt.s32.totalorder %s946_s13, %s942_s16 }
 0x157   : > { %p944_p7 = pnand %p943_p4, %p1217_p12  ;;  %p949_p11 = por %p948_p10, %p947_p9 }
 0x159   : > { %p945_p8 = pneg %p944_p7 }
 0x15b   : > { %p950_p13 = pnand %p949_p11, %p945_p8 }
 0x15d   : > { %953 = shalt.err (!%p950_p13)
}
 0x15e   : > { %s1060_s0 = smov 128   ;;  %s1061_s12 = smov 8  }
 0x15f   : > { %s1314_s14 = sshll.u32 %s1320_s11, 7 }
 0x160   : > { %496 = dma.vmem_to_hbm [thread:$0]  (%p1217_p12), %s1226_s26, %s1314_s14, %s1228_s6, %s1208_s10, %s1060_s0, %s1060_s0, %s1061_s12  }
 0x161 PF: > { %499 = sbr.rel (!%p1130_p5) target bundleno = 397 (0x18d), region = 44  ;;  %s501_s1 = ssub.s32 (%p1130_p5), 3, %s1141_s30 }
 0x162   : > { %s793_s7 = sshll.u32 (%p1130_p5), %s1113_s22, 4  ;;  %p502_p0 = scmp.lt.s32.totalorder (%p1130_p5), %s501_s1, 2 }
 0x163   : > { %s1259_s16 = scalar_lea.vmem (%p1130_p5), %s1305_s5, %s793_s7  }
 0x166   : > { %s1322_s1 = smov (!%p502_p0, %s501_s1), 2 }
 0x167   : > { %s777_s15 = sshll.u32 %s1322_s1, 3 }
 0x168   : > { %p780_p1 = scmp.eq.s32.totalorder %s777_s15, 0 }
 0x169   : > { %s1265_s10 = sshrl.u32 (!%p780_p1), %s1322_s1, 1 }
 0x16a   : > { %510 = sbr.rel (%p780_p1) target bundleno = 397 (0x18d), region = 48  ;;  %p781_p5 = scmp.le.s32.totalorder (!%p780_p1), %s1265_s10, 0 }
 0x16f   : > { %699 = sbr.rel (%p781_p5) target bundleno = 380 (0x17c), region = 140  ;;  %s1023_s22 = smov (!%p781_p5), %s1259_s16  }
 0x170   : > { %s1027_s28 = smov (!%p781_p5), %s1201_s9   ;;  %s1031_s30 = smov (!%p781_p5), 0  }
 0x171   : > { %s1035_s11 = smov (!%p781_p5), 0  }
 0x174 LB: >> { %v575_v1 = vld [vmem:[%s1029_s28] sm:$0xff]  ;;  %v577_v4 = vld [vmem:[%s1029_s28 + $0x8] sm:$0xff]  ;;  %s579_s26 = sadd.s32 1, %s1033_s30  ;;  %s569_s11 = sadd.s32 1, %s1037_s11   ;;  %s1037_s11 = sphi %s1035_s11, %s569_s11   ;;  %s1033_s30 = sphi %s1031_s30, %s1032_s30   ;;  %s1029_s28 = sphi %s1027_s28, %s584_s28   ;;  %s1025_s22 = sphi %s1023_s22, %s585_s22  }
 0x175   : >> { %576 = vst [vmem:[%s1025_s22] sm:$0xff] %v575_v1  ;;  %p580_p12 = scmp.ge.s32.totalorder %s579_s26, %s1265_s10  ;;  %p568_p2 = scmp.ge.s32.totalorder %s569_s11, %s1265_s10 }
 0x176   : >> { %578 = vst [vmem:[%s1025_s22 + $0x8] sm:$0xff] %v577_v4 }
 0x177   : >> { %s1324_s26 = smov (%p580_p12, %s579_s26), 0  ;;  %571 = sbr.rel (!%p568_p2) target bundleno = 372 (0x174), region = 146 }
 0x178   : >> { %s782_s6 = sshll.u32 %s1324_s26, 4  ;;  %s1032_s30 = smov %s1324_s26  }
 0x179   : >> { %s584_s28 = scalar_lea.vmem %s1201_s9, %s782_s6 [#allocation4]   ;;  %s585_s22 = scalar_lea.vmem %s1259_s16, %s782_s6  }
 0x17c PF: > { %s1275_s23 = sand.u32 1, %s1322_s1   ;;  %s794_s25 = sshll.u32 %s1265_s10, 4 }
 0x17d   : > { %s590_s13 = scalar_lea.vmem %s1201_s9, %s794_s25 [#allocation4]   ;;  %s592_s0 = scalar_lea.vmem %s1259_s16, %s794_s25  }
 0x17e   : > { %p787_p3 = scmp.le.s32.totalorder %s1275_s23, 0 }
 0x17f   : > { %s1039_s12 = smov (!%p787_p3), %s592_s0   ;;  %s1043_s14 = smov (!%p787_p3), %s590_s13  }
 0x180   : > { %713 = sbr.rel (%p787_p3) target bundleno = 397 (0x18d), region = 151  ;;  %s1047_s7 = smov (!%p787_p3), 0  }
 0x181   : > { %s1051_s17 = smov (!%p787_p3), 0  }
 0x185 LB: >> { %v602_v45 = vld [vmem:[%s1045_s14] sm:$0xff]  ;;  %s604_s1 = sadd.s32 1, %s1049_s7  ;;  %s596_s17 = sadd.s32 1, %s1053_s17   ;;  %s1053_s17 = sphi %s1051_s17, %s596_s17   ;;  %s1049_s7 = sphi %s1047_s7, %s1048_s7   ;;  %s1045_s14 = sphi %s1043_s14, %s609_s14   ;;  %s1041_s12 = sphi %s1039_s12, %s610_s12  }
 0x186   : >> { %603 = vst [vmem:[%s1041_s12] sm:$0xff] %v602_v45  ;;  %p605_p4 = scmp.ge.s32.totalorder %s604_s1, %s1275_s23  ;;  %p595_p7 = scmp.ge.s32.totalorder %s596_s17, %s1275_s23 }
 0x188   : >> { %s1326_s1 = smov (%p605_p4, %s604_s1), 0  ;;  %598 = sbr.rel (!%p595_p7) target bundleno = 389 (0x185), region = 157 }
 0x189   : >> { %s788_s9 = sshll.u32 %s1326_s1, 3  ;;  %s1048_s7 = smov %s1326_s1  }
 0x18a   : >> { %s609_s14 = scalar_lea.vmem %s590_s13, %s788_s9 [#allocation4]   ;;  %s610_s12 = scalar_lea.vmem %s592_s0, %s788_s9  }
 0x18d PF: > { %p801_p8 = scmp.ge.s32.totalorder %s1021_s21, 2  ;;  %s622_s8 = sand.u32 1, %s1009_s18  }
 0x18e   : > { %s623_s16 = scalar_lea.sflag [#allocation3], %s622_s8 }
 0x18f   : > { %p798_p9 = pnand %p801_p8, %p1134_p6 }
 0x191   : > { %p799_p10 = pneg %p798_p9 }
 0x193   : > { %1004 = dma.done.wait (%p799_p10), %s623_s16, 256  }
 0x194   : > { %1006 = vsyncadd (%p799_p10), %s623_s16, 4294967040  ;;  %p16_p11 = scmp.ge.s32.totalorder %s1117_s24, 4   ;;  %s1315_s18 = smov %s1013_s19 }
 0x195   : > { %s1316_s19 = smov %s1017_s20  ;;  %s1317_s20 = smov %s1128_s27 }
 0x196   : > { %s1318_s21 = smov %s1117_s24  ;;  %18 = sbr.rel (!%p16_p11) target bundleno = 6 (0x6), region = 168 }
 0x19b   :  { %636 = vsyncpa [#allocation3], 1 }
 0x19c   :  { %638 = vsyncpa [#allocation3 + $0x1], 1 }

</bundles_post_ra>
